<compile_context>
chip_gen: v7x
topology: tpu7x:2x2x1
jax: 0.10.0
libtpu: 0.0.40
codegen_flags: <defaults>
</compile_context>

<pallas_src>
import jax
import jax.numpy as jnp
from jax.experimental import pallas as pl
from jax.experimental.pallas import tpu as pltpu

_LANE = 128      # vreg lane width (last-dim alignment)
_SUBLANE = 8     # vreg sublane width (second-to-last-dim alignment, f32)


def _round_up(x, m):
    return (x + m - 1) // m * m


def _autoencoder_kernel(x_ref, we_ref, be_ref, wd_ref, bd_ref,
                        enc_ref, dec_ref):
    """One (TM, F_pad) batch tile; weights/biases are VMEM-resident blocks."""
    x = x_ref[...]                                        # (TM, F_pad) bf16

    # encoder: x @ W_enc  (MXU, f32 accumulation) + b_enc (f32)
    enc = jnp.dot(x, we_ref[...], preferred_element_type=jnp.float32)
    enc = enc + be_ref[...]                               # (1, C_pad) broadcast

    # decoder: enc @ W_dec (bf16 operands, f32 accumulation) + b_dec (f32)
    dec = jnp.dot(enc.astype(wd_ref.dtype), wd_ref[...],
                  preferred_element_type=jnp.float32)
    dec = dec + bd_ref[...]                               # (1, F_pad) broadcast

    enc_ref[...] = enc.astype(enc_ref.dtype)
    dec_ref[...] = dec.astype(dec_ref.dtype)


def autoencoder_forward(x, w_enc, b_enc, w_dec, b_dec,
                        *, block_m=512, compute_dtype=jnp.bfloat16):
    """x: (B, F); w_enc: (F, C); b_enc: (C,); w_dec: (C, F); b_dec: (F,).

    Returns (encoder, decoder) with the same dtype as x, matching the
    PyTorch module's forward semantics.
    """
    B, F = x.shape
    C = w_enc.shape[1]
    out_dtype = x.dtype

    # Lane-dense padding and batch tiling.
    F_pad = _round_up(F, _LANE)
    C_pad = _round_up(C, _LANE)
    TM = min(_round_up(B, _SUBLANE), _round_up(block_m, _SUBLANE))
    B_pad = _round_up(B, TM)

    def pad2(a, rows, cols):
        return jnp.pad(a, ((0, rows - a.shape[0]), (0, cols - a.shape[1])))

    xp = pad2(x, B_pad, F_pad).astype(compute_dtype)
    we = pad2(w_enc, F_pad, C_pad).astype(compute_dtype)
    wd = pad2(w_dec, C_pad, F_pad).astype(compute_dtype)
    be = pad2(b_enc.reshape(1, -1), 1, C_pad).astype(jnp.float32)
    bd = pad2(b_dec.reshape(1, -1), 1, F_pad).astype(jnp.float32)

    grid = (B_pad // TM,)

    in_bytes = jnp.dtype(compute_dtype).itemsize
    out_bytes = jnp.dtype(out_dtype).itemsize
    cost = pl.CostEstimate(
        flops=4 * B_pad * F_pad * C_pad + 2 * B_pad * (C_pad + F_pad),
        transcendentals=0,
        bytes_accessed=(B_pad * F_pad + 2 * F_pad * C_pad) * in_bytes
                       + (C_pad + F_pad) * 4
                       + (B_pad * C_pad + B_pad * F_pad) * out_bytes,
    )

    enc_p, dec_p = pl.pallas_call(
        _autoencoder_kernel,
        out_shape=(
            jax.ShapeDtypeStruct((B_pad, C_pad), out_dtype),
            jax.ShapeDtypeStruct((B_pad, F_pad), out_dtype),
        ),
        grid=grid,
        in_specs=[
            pl.BlockSpec((TM, F_pad), lambda i: (i, 0)),      # x tile
            pl.BlockSpec((F_pad, C_pad), lambda i: (0, 0)),   # W_enc (resident)
            pl.BlockSpec((1, C_pad), lambda i: (0, 0)),       # b_enc (resident)
            pl.BlockSpec((C_pad, F_pad), lambda i: (0, 0)),   # W_dec (resident)
            pl.BlockSpec((1, F_pad), lambda i: (0, 0)),       # b_dec (resident)
        ],
        out_specs=(
            pl.BlockSpec((TM, C_pad), lambda i: (i, 0)),      # encoder tile
            pl.BlockSpec((TM, F_pad), lambda i: (i, 0)),      # decoder tile
        ),
        compiler_params=pltpu.CompilerParams(
            dimension_semantics=("parallel",),
            vmem_limit_bytes=64 << 20,
        ),
        cost_estimate=cost,
    )(xp, we, be, wd, bd)

    # Slice away lane / batch padding.
    return enc_p[:B, :C], dec_p[:B, :F]


def init_params(key, num_features, num_components, dtype=jnp.float32):
    """Deterministic init mimicking nn.Linear's uniform(-1/sqrt(in), 1/sqrt(in))."""
    k1, k2, k3, k4 = jax.random.split(key, 4)
    bound_e = 1.0 / float(num_features) ** 0.5
    bound_d = 1.0 / float(num_components) ** 0.5
    # Stored already transposed to (in, out) for the kernel.
    w_enc = jax.random.uniform(k1, (num_features, num_components), dtype,
                               -bound_e, bound_e)
    b_enc = jax.random.uniform(k2, (num_components,), dtype, -bound_e, bound_e)
    w_dec = jax.random.uniform(k3, (num_components, num_features), dtype,
                               -bound_d, bound_d)
    b_dec = jax.random.uniform(k4, (num_features,), dtype, -bound_d, bound_d)
    return w_enc, b_enc, w_dec, b_dec


if __name__ == "__main__":
    key = jax.random.PRNGKey(0)
    batch, num_features, num_components = 16, 32, 8

    kx, kp = jax.random.split(key)
    x = jax.random.normal(kx, (batch, num_features), jnp.float32)
    w_enc, b_enc, w_dec, b_dec = init_params(kp, num_features, num_components)

    # block_m=8 forces a 2-step batch grid even at this tiny size, exercising
    # the tiled / resident-weight path.
    enc, dec = autoencoder_forward(x, w_enc, b_enc, w_dec, b_dec, block_m=8)
    jax.block_until_ready((enc, dec))

    # Sanity check vs plain-JAX f32 reference (bf16 operands -> loose tol).
    enc_ref = x @ w_enc + b_enc[None, :]
    dec_ref = enc_ref @ w_dec + b_dec[None, :]
    assert enc.shape == (batch, num_components) and dec.shape == (batch, num_features)
    assert jnp.allclose(enc, enc_ref, atol=3e-2, rtol=3e-2)
    assert jnp.allclose(dec, dec_ref, atol=3e-2, rtol=3e-2)

    print("KERNEL_OK")
</pallas_src>

<mosaic_0001>
module attributes {stable_mosaic.version = 11 : i64} {
  func.func @_autoencoder_kernel(%arg0: i32, %arg1: memref<8x128xbf16, #tpu.memory_space<vmem>>, %arg2: memref<128x128xbf16, #tpu.memory_space<vmem>>, %arg3: memref<1x128xf32, #tpu.memory_space<vmem>>, %arg4: memref<128x128xbf16, #tpu.memory_space<vmem>>, %arg5: memref<1x128xf32, #tpu.memory_space<vmem>>, %arg6: memref<8x128xf32, #tpu.memory_space<vmem>>, %arg7: memref<8x128xf32, #tpu.memory_space<vmem>>) attributes {dimension_semantics = [#tpu.dimension_semantics<parallel>], iteration_bounds = array<i64: 2>, scalar_prefetch = 0 : i64, scratch_operands = 0 : i64, tpu.core_type = #tpu.core_type<tc>, window_params = [{transform_indices = @transform_0, window_bounds = array<i64: 8, 128>}, {pipeline_mode = #tpu.pipeline_mode<synchronous>, transform_indices = @transform_1, window_bounds = array<i64: 128, 128>}, {pipeline_mode = #tpu.pipeline_mode<synchronous>, transform_indices = @transform_2, window_bounds = array<i64: 1, 128>}, {pipeline_mode = #tpu.pipeline_mode<synchronous>, transform_indices = @transform_3, window_bounds = array<i64: 128, 128>}, {pipeline_mode = #tpu.pipeline_mode<synchronous>, transform_indices = @transform_4, window_bounds = array<i64: 1, 128>}, {transform_indices = @transform_5, window_bounds = array<i64: 8, 128>}, {transform_indices = @transform_6, window_bounds = array<i64: 8, 128>}]} {
    %c0 = arith.constant 0 : index
    %c0_0 = arith.constant 0 : index
    %0 = vector.load %arg1[%c0, %c0_0] : memref<8x128xbf16, #tpu.memory_space<vmem>>, vector<8x128xbf16>
    %c0_1 = arith.constant 0 : index
    %c0_2 = arith.constant 0 : index
    %1 = vector.load %arg2[%c0_1, %c0_2] : memref<128x128xbf16, #tpu.memory_space<vmem>>, vector<128x128xbf16>
    %cst = arith.constant dense<0.000000e+00> : vector<8x128xf32>
    %2 = tpu.matmul %0, %1, %cst {dimension_numbers = #tpu.dot_dimension_numbers<[1], [0], [0], [1], [0, 0, 1, 1], [], []>} : vector<8x128xbf16>, vector<128x128xbf16>, vector<8x128xf32> -> vector<8x128xf32>
    %c0_3 = arith.constant 0 : index
    %c0_4 = arith.constant 0 : index
    %3 = vector.load %arg3[%c0_3, %c0_4] : memref<1x128xf32, #tpu.memory_space<vmem>>, vector<1x128xf32>
    %4 = vector.broadcast %3 : vector<1x128xf32> to vector<8x128xf32>
    %5 = arith.addf %2, %4 : vector<8x128xf32>
    %6 = arith.truncf %5 : vector<8x128xf32> to vector<8x128xbf16>
    %c0_5 = arith.constant 0 : index
    %c0_6 = arith.constant 0 : index
    %7 = vector.load %arg4[%c0_5, %c0_6] : memref<128x128xbf16, #tpu.memory_space<vmem>>, vector<128x128xbf16>
    %cst_7 = arith.constant dense<0.000000e+00> : vector<8x128xf32>
    %8 = tpu.matmul %6, %7, %cst_7 {dimension_numbers = #tpu.dot_dimension_numbers<[1], [0], [0], [1], [0, 0, 1, 1], [], []>} : vector<8x128xbf16>, vector<128x128xbf16>, vector<8x128xf32> -> vector<8x128xf32>
    %c0_8 = arith.constant 0 : index
    %c0_9 = arith.constant 0 : index
    %9 = vector.load %arg5[%c0_8, %c0_9] : memref<1x128xf32, #tpu.memory_space<vmem>>, vector<1x128xf32>
    %10 = vector.broadcast %9 : vector<1x128xf32> to vector<8x128xf32>
    %11 = arith.addf %8, %10 : vector<8x128xf32>
    %c0_10 = arith.constant 0 : index
    %c0_11 = arith.constant 0 : index
    %12 = vector.load %arg6[%c0_10, %c0_11] : memref<8x128xf32, #tpu.memory_space<vmem>>, vector<8x128xf32>
    tpu.vector_store %arg6[%c0_10, %c0_11], %5 {strides = array<i32>} : memref<8x128xf32, #tpu.memory_space<vmem>>, vector<8x128xf32>,
    %c0_12 = arith.constant 0 : index
    %c0_13 = arith.constant 0 : index
    %13 = vector.load %arg7[%c0_12, %c0_13] : memref<8x128xf32, #tpu.memory_space<vmem>>, vector<8x128xf32>
    tpu.vector_store %arg7[%c0_12, %c0_13], %11 {strides = array<i32>} : memref<8x128xf32, #tpu.memory_space<vmem>>, vector<8x128xf32>,
    return
  }
  func.func @transform_0(%arg0: i32) -> (i32, i32) {
    %c0_i32 = arith.constant 0 : i32
    %c0_i32_0 = arith.constant 0 : i32
    return %arg0, %c0_i32 : i32, i32
  }
  func.func @transform_1(%arg0: i32) -> (i32, i32) {
    %c0_i32 = arith.constant 0 : i32
    %c0_i32_0 = arith.constant 0 : i32
    %c0_i32_1 = arith.constant 0 : i32
    return %c0_i32, %c0_i32_0 : i32, i32
  }
  func.func @transform_2(%arg0: i32) -> (i32, i32) {
    %c0_i32 = arith.constant 0 : i32
    %c0_i32_0 = arith.constant 0 : i32
    %c0_i32_1 = arith.constant 0 : i32
    return %c0_i32, %c0_i32_0 : i32, i32
  }
  func.func @transform_3(%arg0: i32) -> (i32, i32) {
    %c0_i32 = arith.constant 0 : i32
    %c0_i32_0 = arith.constant 0 : i32
    %c0_i32_1 = arith.constant 0 : i32
    return %c0_i32, %c0_i32_0 : i32, i32
  }
  func.func @transform_4(%arg0: i32) -> (i32, i32) {
    %c0_i32 = arith.constant 0 : i32
    %c0_i32_0 = arith.constant 0 : i32
    %c0_i32_1 = arith.constant 0 : i32
    return %c0_i32, %c0_i32_0 : i32, i32
  }
  func.func @transform_5(%arg0: i32) -> (i32, i32) {
    %c0_i32 = arith.constant 0 : i32
    %c0_i32_0 = arith.constant 0 : i32
    return %arg0, %c0_i32 : i32, i32
  }
  func.func @transform_6(%arg0: i32) -> (i32, i32) {
    %c0_i32 = arith.constant 0 : i32
    %c0_i32_0 = arith.constant 0 : i32
    return %arg0, %c0_i32 : i32, i32
  }
}

</mosaic_0001>

<bundles_post_ra>
// kernel: tpu_custom_call.1
= control target key start
LH: loop header
LB: loop body
LE: loop exit
PB: predicated region body
PF: predicated region fallthrough
CT: control target
= control target key end

     0   :  { %12 = vsyncpa [#allocation3], 0  ;;  %s1554_s0 = inlined_call_operand.hbm [shape: bf16[16,128], index: 0, kind: input, shape index: {}]   ;;  %s1555_s1 = inlined_call_operand.hbm [shape: bf16[128,128], index: 1, kind: input, shape index: {}]   ;;  %s1556_s2 = inlined_call_operand.hbm [shape: f32[1,128], index: 2, kind: input, shape index: {}]   ;;  %s1557_s3 = inlined_call_operand.hbm [shape: bf16[128,128], index: 3, kind: input, shape index: {}]   ;;  %s1558_s4 = inlined_call_operand.hbm [shape: f32[1,128], index: 4, kind: input, shape index: {}]   ;;  %s1559_s5 = inlined_call_operand.hbm [shape: f32[16,128], index: 5, kind: output, shape index: {0}]   ;;  %s1560_s6 = inlined_call_operand.hbm [shape: f32[16,128], index: 6, kind: output, shape index: {1}]  }
   0x1   :  { %14 = vsyncpa [#allocation3 + $0x1], 0 }
   0x2   :  { %15 = vsyncpa [#allocation6], 0 }
   0x3   :  { %16 = vsyncpa [#allocation9], 0 }
   0x4   :  { %17 = vsyncpa [#allocation4], 0 }
   0x5   :  { %19 = vsyncpa [#allocation4 + $0x1], 0 }
   0x6   :  { %20 = vsyncpa [#allocation13], 0 }
   0x7   :  { %22 = vsyncpa [#allocation13 + $0x1], 0  ;;  %s1238_s21 = smov 0   ;;  %s1240_s22 = smov 0  }
   0x8   :  { %s1242_s23 = smov 0   ;;  %s1244_s24 = smov 0  }
   0x9 LB: > { %s1192_s25 = smov [#allocation5]   ;;  %s1259_s27 = sadd.s32 4294967295, %s1190_s24   ;;  %s1190_s24 = sphi %s1244_s24, %s1584_s24   ;;  %s1186_s23 = sphi %s1242_s23, %s1583_s23   ;;  %s1182_s22 = sphi %s1240_s22, %s1582_s22   ;;  %s1178_s21 = sphi %s1238_s21, %s1581_s21  }
   0xa   : > { %s207_s26 = sshll.u32 %s1192_s25, 4  ;;  %p732_p0 = scmp.ge.s32.totalorder %s1190_s24, 1  ;;  %s1264_s26 = int_to_ptr.vmem [resolvable:$true] %s207_s26 }
   0xb   : > { %p1561_p1 = scmp.eq.s32.totalorder %s1259_s27, 0  ;;  %p195_p2 = scmp.lt.s32.totalorder %s1190_s24, 3 }
   0xc   : > { %s1193_s29 = smov [#allocation8]   ;;  %s1194_s8 = smov [#allocation7]  }
   0xd   : > { %p1266_p3 = pnand %p732_p0, %p195_p2  ;;  %s231_s30 = sshll.u32 %s1193_s29, 4  ;;  %s1279_s30 = int_to_ptr.vmem [resolvable:$true] %s231_s30 }
   0xe   : > { %s221_s9 = sshll.u32 %s1194_s8, 4  ;;  %s942_s12 = scalar_lea.hbm %s1555_s1, 1024  ;;  %s1281_s9 = int_to_ptr.vmem [resolvable:$true] %s221_s9 }
   0xf   : > { %s1564_s28 = scalar_select %p1266_p3, 1, 0 }
  0x10   : > { %p852_p5 = pneg %p1266_p3  ;;  %p943_p7 = scmp.ne.s32.totalorder %s1555_s1, %s942_s12 }
  0x11   : > { %p949_p11 = scmp.lt.u32.totalorder %s942_s12, %s1555_s1 }
  0x12   : > { %p1275_p6 = pnand %p852_p5, %p1561_p1 }
  0x14   : > { %p1291_p8 = pneg %p1275_p6 }
  0x16   : > { %p945_p9 = pnand %p1291_p8, %p943_p7 }
  0x18   : > { %p946_p10 = pneg %p945_p9 }
  0x1a   : > { %p951_p12 = pnand %p949_p11, %p946_p10 }
  0x1c   : > { %954 = shalt.err (!%p951_p12)
}
  0x1d   : > { %s955_s18 = scalar_lea.vmem %s1264_s26, 1024  ;;  %p963_p5 = scmp.lt.s32.totalorder %s1264_s26, %s1264_s26 }
  0x1e   : > { %p956_p13 = scmp.ne.s32.totalorder %s1264_s26, %s955_s18  ;;  %p964_p4 = scmp.lt.s32.totalorder %s955_s18, %s955_s18 }
  0x20   : > { %p958_p0 = pnand %p956_p13, %p1291_p8  ;;  %p965_p7 = por %p964_p4, %p963_p5 }
  0x22   : > { %p959_p2 = pneg %p958_p0 }
  0x24   : > { %p966_p9 = pnand %p965_p7, %p959_p2 }
  0x26   : > { %969 = shalt.err (!%p966_p9)
}
  0x27   : > { %s1195_s19 = smov 64   ;;  %s1196_s20 = smov 4  }
  0x28   : > { %855 = dma.hbm_to_vmem [thread:$0]  (!%p1275_p6), %s1555_s1, 1024, %s1264_s26, [#allocation6], %s1195_s19, %s1195_s19, %s1196_s20  }
  0x29   : > { %s970_s11 = scalar_lea.hbm %s1557_s3, 1024 }
  0x2a   : > { %p971_p4 = scmp.ne.s32.totalorder %s1557_s3, %s970_s11  ;;  %p977_p12 = scmp.lt.u32.totalorder %s970_s11, %s1557_s3 }
  0x2c   : > { %p973_p10 = pnand %p971_p4, %p1291_p8 }
  0x2e   : > { %p974_p11 = pneg %p973_p10 }
  0x30   : > { %p979_p13 = pnand %p977_p12, %p974_p11 }
  0x32   : > { %982 = shalt.err (!%p979_p13)
}
  0x33   : > { %s983_s26 = scalar_lea.vmem %s1279_s30, 1024  ;;  %p991_p7 = scmp.lt.s32.totalorder %s1279_s30, %s1279_s30 }
  0x34   : > { %p984_p0 = scmp.ne.s32.totalorder %s1279_s30, %s983_s26  ;;  %p992_p9 = scmp.lt.s32.totalorder %s983_s26, %s983_s26 }
  0x36   : > { %p986_p2 = pnand %p984_p0, %p1291_p8  ;;  %p993_p4 = por %p992_p9, %p991_p7 }
  0x38   : > { %p987_p5 = pneg %p986_p2 }
  0x3a   : > { %p994_p10 = pnand %p993_p4, %p987_p5 }
  0x3c   : > { %997 = shalt.err (!%p994_p10)
}
  0x3d   : > { %861 = dma.hbm_to_vmem [thread:$0]  (!%p1275_p6), %s1557_s3, 1024, %s1279_s30, [#allocation9], %s1195_s19, %s1195_s19, %s1196_s20  }
  0x3e   : > { %s998_s8 = scalar_lea.hbm %s1556_s2, 16 }
  0x3f   : > { %p999_p11 = scmp.ne.s32.totalorder %s1556_s2, %s998_s8  ;;  %p1005_p0 = scmp.lt.u32.totalorder %s998_s8, %s1556_s2 }
  0x41   : > { %p1001_p12 = pnand %p999_p11, %p1291_p8 }
  0x43   : > { %p1002_p13 = pneg %p1001_p12 }
  0x45   : > { %p1007_p2 = pnand %p1005_p0, %p1002_p13 }
  0x47   : > { %1010 = shalt.err (!%p1007_p2)
}
  0x48   : > { %s1011_s30 = scalar_lea.vmem %s1281_s9, 16  ;;  %s1018_s19 = scalar_lea.vmem %s1281_s9, 32 }
  0x49   : > { %p1012_p5 = scmp.ne.s32.totalorder %s1281_s9, %s1011_s30  ;;  %p1019_p4 = scmp.lt.s32.totalorder %s1281_s9, %s1281_s9 }
  0x4a   : > { %p1020_p10 = scmp.lt.s32.totalorder %s1018_s19, %s1011_s30 }
  0x4b   : > { %p1014_p7 = pnand %p1012_p5, %p1291_p8 }
  0x4c   : > { %p1021_p11 = por %p1020_p10, %p1019_p4 }
  0x4d   : > { %p1015_p9 = pneg %p1014_p7 }
  0x4f   : > { %p1022_p12 = pnand %p1021_p11, %p1015_p9 }
  0x51   : > { %1025 = shalt.err (!%p1022_p12)
}
  0x52   : > { %858 = dma.hbm_to_vmem [thread:$0]  (!%p1275_p6), %s1556_s2, 16, %s1281_s9, [#allocation6]  }
  0x53   : > { %s1197_s16 = smov [#allocation10]   ;;  %s1026_s25 = scalar_lea.hbm %s1558_s4, 16 }
  0x54   : > { %s245_s26 = sshll.u32 %s1197_s16, 4  ;;  %p1027_p13 = scmp.ne.s32.totalorder %s1558_s4, %s1026_s25  ;;  %s246_s26 = int_to_ptr.vmem [resolvable:$true] %s245_s26 }
  0x55   : > { %p1033_p5 = scmp.lt.u32.totalorder %s1026_s25, %s1558_s4 }
  0x56   : > { %p1029_p0 = pnand %p1027_p13, %p1291_p8 }
  0x58   : > { %p1030_p2 = pneg %p1029_p0 }
  0x5a   : > { %p1035_p7 = pnand %p1033_p5, %p1030_p2 }
  0x5c   : > { %1038 = shalt.err (!%p1035_p7)
}
  0x5d   : > { %s1039_s9 = scalar_lea.vmem %s246_s26, 16  ;;  %s1046_s12 = scalar_lea.vmem %s246_s26, 32 }
  0x5e   : > { %p1040_p9 = scmp.ne.s32.totalorder %s246_s26, %s1039_s9  ;;  %p1047_p11 = scmp.lt.s32.totalorder %s246_s26, %s246_s26 }
  0x5f   : > { %p1048_p12 = scmp.lt.s32.totalorder %s1046_s12, %s1039_s9 }
  0x60   : > { %p1042_p4 = pnand %p1040_p9, %p1291_p8 }
  0x61   : > { %p1049_p1 = por %p1048_p12, %p1047_p11 }
  0x62   : > { %p1043_p10 = pneg %p1042_p4 }
  0x64   : > { %p1050_p3 = pnand %p1049_p1, %p1043_p10 }
  0x66   : > { %1053 = shalt.err (!%p1050_p3)
}
  0x67   : > { %864 = dma.hbm_to_vmem [thread:$0]  (!%p1275_p6), %s1558_s4, 16, %s246_s26, [#allocation9]  }
  0x68   : > { %s731_s15 = sadd.s32 4294967294, %s1190_s24   ;;  %s1379_s7 = sadd.s32 1, %s1190_s24  }
  0x69   : > { %s32_s19 = ssub.s32 %s1190_s24, %s1379_s7  ;;  %s35_s20 = sadd.s32 1, %s1186_s23 }
  0x6a   : > { %p33_p1 = scmp.eq.s32.totalorder %s32_s19, 0  ;;  %p42_p3 = scmp.ne.s32.totalorder %s1186_s23, %s1182_s22 }
  0x6b   : > { %p43_p8 = scmp.eq.s32.totalorder %s1190_s24, 0  ;;  %p48_p13 = scmp.ne.s32.totalorder %s1182_s22, %s1178_s21 }
  0x6c   : > { %s1390_s14 = scalar_select %p33_p1, %s1186_s23, %s35_s20  }
  0x6d   : > { %p1392_p0 = por %p43_p8, %p42_p3  ;;  %p1568_p2 = scmp.eq.s32.totalorder %s1259_s27, 0 }
  0x6e   : > { %p156_p5 = scmp.eq.s32.totalorder %s1259_s27, 1  ;;  %p162_p7 = scmp.eq.s32.totalorder %s731_s15, 1 }
  0x6f   : > { %p1398_p6 = por %p1568_p2, %p48_p13  ;;  %p880_p9 = scmp.lt.s32.totalorder %s1190_s24, 2 }
  0x70   : > { %s256_s17 = sand.u32 1, %s1186_s23   ;;  %p1405_p4 = por %p156_p5, %p42_p3 }
  0x71   : > { %p1409_p10 = por %p162_p7, %p48_p13  ;;  %s738_s29 = sshll.u32 %s256_s17, 2 }
  0x72   : > { %s1570_s18 = scalar_select %p1405_p4, 1, 0 }
  0x73   : > { %s1571_s25 = scalar_select %p1409_p10, 1, 0 }
  0x74   : > { %s739_s8 = sshll.u32 %s1190_s24, 6  ;;  %s260_s12 = scalar_lea.vmem [#allocation2], %s738_s29 }
  0x75   : > { %s1417_s9 = scalar_lea.hbm %s1554_s0, %s739_s8  ;;  %s267_s13 = sshll.u32 %s260_s12, 4  ;;  %s1419_s13 = int_to_ptr.vmem [resolvable:$true] %s267_s13 }
  0x76   : > { %p1423_p11 = pnand %p880_p9, %p1392_p0  ;;  %s257_s15 = scalar_lea.sflag [#allocation3], %s256_s17 }
  0x77   : > { %s1054_s19 = scalar_lea.hbm %s1417_s9, 64  ;;  %s1059_s8 = scalar_lea.hbm %s1554_s0, 128 }
  0x78   : > { %p1055_p12 = scmp.ne.s32.totalorder %s1417_s9, %s1054_s19  ;;  %p1056_p1 = pneg %p1423_p11 }
  0x79   : > { %p1060_p13 = scmp.lt.u32.totalorder %s1417_s9, %s1554_s0  ;;  %p1061_p0 = scmp.lt.u32.totalorder %s1059_s8, %s1054_s19 }
  0x7a   : > { %p1057_p3 = pnand %p1056_p1, %p1055_p12  ;;  %p1063_p5 = scmp.lt.u32.totalorder %s1054_s19, %s1417_s9 }
  0x7b   : > { %p1062_p2 = por %p1061_p0, %p1060_p13 }
  0x7c   : > { %p1058_p8 = pneg %p1057_p3 }
  0x7d   : > { %p1064_p7 = por %p1063_p5, %p1062_p2 }
  0x7f   : > { %p1065_p9 = pnand %p1064_p7, %p1058_p8 }
  0x81   : > { %1068 = shalt.err (!%p1065_p9)
}
  0x82   : > { %s1069_s17 = scalar_lea.vmem %s1419_s13, 64  ;;  %s1198_s11 = smov [#allocation2]  }
  0x83   : > { %p1070_p12 = scmp.ne.s32.totalorder %s1419_s13, %s1069_s17  ;;  %s1074_s12 = sshll.u32 %s1198_s11, 4  ;;  %s1075_s12 = int_to_ptr.vmem [resolvable:$false] %s1074_s12 }
  0x84   : > { %s1076_s20 = scalar_lea.vmem %s1075_s12, 128  ;;  %p1077_p4 = scmp.lt.s32.totalorder %s1419_s13, %s1075_s12 }
  0x85   : > { %p1072_p3 = pnand %p1070_p12, %p1056_p1  ;;  %p1078_p13 = scmp.lt.s32.totalorder %s1076_s20, %s1069_s17 }
  0x87   : > { %p1073_p10 = pneg %p1072_p3  ;;  %p1079_p0 = por %p1078_p13, %p1077_p4 }
  0x89   : > { %p1080_p2 = pnand %p1079_p0, %p1073_p10 }
  0x8b   : > { %1083 = shalt.err (!%p1080_p2)
}
  0x8c   : > { %868 = dma.hbm_to_vmem [thread:$0]  (!%p1423_p11), %s1417_s9, 64, %s1419_s13, %s257_s15  }
  0x8d   : > { %p1573_p8 = scmp.ne.s32.totalorder %s1564_s28, 0 }
  0x8e   : > { %s1455_s19 = sand.u32 (!%p1573_p8), 1, %s1182_s22  }
  0x8f   : > { %276 = sbr.rel (%p1573_p8) target bundleno = 635 (0x27b), region = 40  ;;  %s741_s29 = sshll.u32 (!%p1573_p8), %s1455_s19, 2 }
  0x90   : > { %s279_s8 = scalar_lea.sflag (!%p1573_p8), [#allocation3], %s1455_s19  ;;  %s1459_s16 = scalar_lea.vmem (!%p1573_p8), [#allocation2], %s741_s29 }
  0x96   : > { %1157 = dma.done.wait (%p1398_p6), %s279_s8, 64  }
  0x97   : > { %1159 = vsyncadd (%p1398_p6), %s279_s8, 4294967232  ;;  %p1574_p4 = scmp.eq.s32.totalorder %s1259_s27, 0 }
  0x99   : > { %1161 = dma.done.wait (%p1574_p4), [#allocation6], 1040   ;;  %p1575_p10 = pmov %p1574_p4 }
  0x9a   : > { %p1576_p11 = pmov %p1574_p4 }
  0x9b   : > { %1163 = vsyncadd (%p1575_p10), [#allocation6], 4294966256 }
  0x9c   : > { %1165 = dma.done.wait (%p1576_p11), [#allocation9], 1040   ;;  %p1577_p1 = pmov %p1574_p4 }
  0x9d   : > { %v1199_v0 = vmov 0.0   ;;  %vm1200_vm0 = vmmov 0   ;;  %v926_v1 = vld [vmem:[#allocation5] sm:$0xff]   ;;  %v927_v2 = vld [vmem:[#allocation5 + $0x8] sm:$0xff]   ;;  %v928_v3 = vld [vmem:[#allocation5 + $0x10] sm:$0xff]   ;;  %s746_s28 = sshll.u32 %s1455_s19, 3 }
  0x9e   : > { %1167 = vsyncadd (%p1577_p1), [#allocation9], 4294966256  ;;  %790 = vmatprep.subr.bf16.mxu0 %v1199_v0  ;;  %806 = vmatprep.mubr.msk.bf16.mxu0 %vm1200_vm0, %v1199_v0  ;;  %v934_v4 = vld [vmem:[#allocation8] sm:$0xff]   ;;  %v929_v5 = vld [vmem:[#allocation5 + $0x18] sm:$0xff]   ;;  %s324_s26 = scalar_lea.vmem [#allocation11], %s746_s28  ;;  %s768_s9 = sshll.u32 %s1259_s27, 7 }
  0x9f   : > { %810 = vmatprep.subr.bf16.mxu1 %v1199_v0  ;;  %826 = vmatprep.mubr.msk.bf16.mxu1 %vm1200_vm0, %v1199_v0  ;;  %v935_v6 = vld [vmem:[#allocation8 + $0x8] sm:$0xff]   ;;  %v930_v7 = vld [vmem:[#allocation5 + $0x20] sm:$0xff]   ;;  %v936_v8 = vld [vmem:[#allocation8 + $0x10] sm:$0xff]   ;;  %s578_s13 = sshll.u32 %s324_s26, 4  ;;  %s1483_s10 = scalar_lea.hbm %s1559_s5, %s768_s9  ;;  %s579_s13 = int_to_ptr.vmem [resolvable:$true] %s578_s13 }
  0xa0   : > { %791 = vmatpush3.bf16.msra.mxu0 %v926_v1  ;;  %811 = vmatpush3.bf16.msra.mxu1 %v934_v4  ;;  %v931_v9 = vld [vmem:[#allocation5 + $0x28] sm:$0xff]   ;;  %v937_v10 = vld [vmem:[#allocation8 + $0x18] sm:$0xff]   ;;  %v932_v11 = vld [vmem:[#allocation5 + $0x30] sm:$0xff]   ;;  %s560_s17 = scalar_lea.sflag [#allocation4], %s1455_s19  ;;  %s1084_s11 = scalar_lea.vmem %s579_s13, 128 }
  0xa1   : > { %792 = vmatprep.subr.bf16.mxu0 %v1199_v0  ;;  %812 = vmatprep.subr.bf16.mxu1 %v1199_v0  ;;  %v938_v12 = vld [vmem:[#allocation8 + $0x20] sm:$0xff]   ;;  %v933_v13 = vld [vmem:[#allocation5 + $0x38] sm:$0xff]   ;;  %v939_v14 = vld [vmem:[#allocation8 + $0x28] sm:$0xff]   ;;  %p1085_p6 = scmp.ne.s32.totalorder %s579_s13, %s1084_s11  ;;  %p1578_p5 = scmp.ne.s32.totalorder %s1570_s18, 0 }
  0xa2   : > { %v333_v15 = vld [vmem:[%s1459_s16] sm:$0xf]  ;;  %v748_v18 = vld [vmem:[#allocation7] ss:$0 sm:$0xff]  ;;  %s1201_s12 = smov [#allocation11]  }
  0xa3   : > { %v940_v16 = vld [vmem:[#allocation8 + $0x30] sm:$0xff]   ;;  %v941_v17 = vld [vmem:[#allocation8 + $0x38] sm:$0xff]   ;;  %p1086_p7 = pnand %p1085_p6, %p1578_p5  ;;  %s1088_s20 = sshll.u32 %s1201_s12, 4  ;;  %s1089_s20 = int_to_ptr.vmem [resolvable:$false] %s1088_s20 }
  0xa4   : > { %793 = vmatpush3.bf16.msra.mxu0 %v927_v2  ;;  %813 = vmatpush3.bf16.msra.mxu1 %v935_v6  ;;  %s1090_s29 = scalar_lea.vmem %s1089_s20, 256  ;;  %p1091_p12 = scmp.lt.s32.totalorder %s579_s13, %s1089_s20 }
  0xa5   : > { %794 = vmatprep.subr.bf16.mxu0 %v1199_v0  ;;  %814 = vmatprep.subr.bf16.mxu1 %v1199_v0  ;;  %p1087_p9 = pneg %p1086_p7  ;;  %p1092_p3 = scmp.lt.s32.totalorder %s1090_s29, %s1084_s11 }
  0xa7   : > { %p1093_p13 = por %p1092_p3, %p1091_p12 }
  0xa8   : > { %795 = vmatpush3.bf16.msra.mxu0 %v928_v3  ;;  %815 = vmatpush3.bf16.msra.mxu1 %v936_v8 }
  0xa9   : > { %796 = vmatprep.subr.bf16.mxu0 %v1199_v0  ;;  %816 = vmatprep.subr.bf16.mxu1 %v1199_v0  ;;  %p1094_p0 = pnand %p1093_p13, %p1087_p9 }
  0xac   : > { %797 = vmatpush3.bf16.msra.mxu0 %v929_v5  ;;  %817 = vmatpush3.bf16.msra.mxu1 %v937_v10 }
  0xad   : > { %798 = vmatprep.subr.bf16.mxu0 %v1199_v0  ;;  %818 = vmatprep.subr.bf16.mxu1 %v1199_v0 }
  0xb0   : > { %799 = vmatpush3.bf16.msra.mxu0 %v930_v7  ;;  %819 = vmatpush3.bf16.msra.mxu1 %v938_v12 }
  0xb1   : > { %800 = vmatprep.subr.bf16.mxu0 %v1199_v0  ;;  %820 = vmatprep.subr.bf16.mxu1 %v1199_v0 }
  0xb4   : > { %801 = vmatpush3.bf16.msra.mxu0 %v931_v9  ;;  %821 = vmatpush3.bf16.msra.mxu1 %v939_v14 }
  0xb5   : > { %802 = vmatprep.subr.bf16.mxu0 %v1199_v0  ;;  %822 = vmatprep.subr.bf16.mxu1 %v1199_v0 }
  0xb8   : > { %803 = vmatpush3.bf16.msra.mxu0 %v932_v11  ;;  %823 = vmatpush3.bf16.msra.mxu1 %v940_v16 }
  0xb9   : > { %804 = vmatprep.subr.bf16.mxu0 %v1199_v0  ;;  %824 = vmatprep.subr.bf16.mxu1 %v1199_v0 }
  0xbc   : > { %805 = vmatpush3.bf16.msra.mxu0 %v933_v13  ;;  %825 = vmatpush3.bf16.msra.mxu1 %v941_v17 }
  0xbf   : > { %807 = vmatmul.mubr.bf16.vlgmr.msra.gmra.mrb[0].mxu0 %v333_v15 }
 0x192   : > { %v439_v19 = vpop.f32.mrb[0].mxu0 }
 0x193   : > { %v440_v20 = vadd.f32 %v748_v18, %v439_v19  ;;  %v808_v21 = vpop.f32.mrb[1].mxu0 }
 0x194   : > { %v442_v22 = vpop.f32.mrb[2].mxu0 }
 0x195   : > { %v445_v23 = vpack.c.bf16 %v440_v20, %v440_v20  ;;  %557 = vst [vmem:[%s324_s26] sm:$0xff] %v440_v20  ;;  %v809_v24 = vpop.f32.mrb[3].mxu0 }
 0x197   : > { %827 = vmatmul.mubr.bf16.vlgmr.msra.gmra.mrb[0].mxu1 %v445_v23 }
 0x198   : > { %1097 = shalt.err (!%p1094_p0)
}
 0x199   : > { %s1098_s8 = scalar_lea.hbm %s1483_s10, 128  ;;  %s1102_s30 = scalar_lea.hbm %s1559_s5, 256 }
 0x19a   : > { %p1099_p2 = scmp.ne.s32.totalorder %s1483_s10, %s1098_s8  ;;  %p1103_p10 = scmp.lt.u32.totalorder %s1483_s10, %s1559_s5 }
 0x19b   : > { %p1104_p11 = scmp.lt.u32.totalorder %s1102_s30, %s1098_s8  ;;  %p1106_p6 = scmp.lt.u32.totalorder %s1098_s8, %s1483_s10 }
 0x19c   : > { %p1100_p8 = pnand %p1099_p2, %p1578_p5 }
 0x19d   : > { %p1105_p1 = por %p1104_p11, %p1103_p10 }
 0x19e   : > { %p1101_p4 = pneg %p1100_p8 }
 0x19f   : > { %p1107_p7 = por %p1106_p6, %p1105_p1 }
 0x1a1   : > { %p1108_p9 = pnand %p1107_p7, %p1101_p4 }
 0x1a3   : > { %1111 = shalt.err (!%p1108_p9)
}
 0x1a4   : > { %848 = dma.vmem_to_hbm [thread:$0]  (%p1578_p5), %s579_s13, 128, %s1483_s10, %s560_s17   ;;  %v757_v25 = vld [vmem:[#allocation10] ss:$0 sm:$0xff] }
 0x1a5   : > { %s331_s11 = scalar_lea.vmem [#allocation12], %s746_s28  ;;  %s1510_s16 = scalar_lea.hbm %s1560_s6, %s768_s9 }
 0x1a6   : > { %s591_s20 = sshll.u32 %s331_s11, 4  ;;  %s565_s13 = scalar_lea.sflag [#allocation13], %s1455_s19  ;;  %s1512_s20 = int_to_ptr.vmem [resolvable:$true] %s591_s20 }
 0x1a7   : > { %s1112_s28 = scalar_lea.vmem %s1512_s20, 128  ;;  %s1202_s27 = smov [#allocation12]  }
 0x1a8   : > { %p1113_p12 = scmp.ne.s32.totalorder %s1512_s20, %s1112_s28  ;;  %s1116_s10 = sshll.u32 %s1202_s27, 4  ;;  %s1117_s10 = int_to_ptr.vmem [resolvable:$false] %s1116_s10 }
 0x1a9   : > { %s1118_s17 = scalar_lea.vmem %s1117_s10, 256  ;;  %p1119_p0 = scmp.lt.s32.totalorder %s1512_s20, %s1117_s10 }
 0x1aa   : > { %p1114_p3 = pnand %p1113_p12, %p1578_p5  ;;  %p1120_p2 = scmp.lt.s32.totalorder %s1118_s17, %s1112_s28 }
 0x1ac   : > { %p1115_p13 = pneg %p1114_p3  ;;  %p1121_p8 = por %p1120_p2, %p1119_p0 }
 0x1ae   : > { %p1122_p4 = pnand %p1121_p8, %p1115_p13 }
 0x26a   : > { %v551_v26 = vpop.f32.mrb[0].mxu1 }
 0x26b   : > { %v552_v27 = vadd.f32 %v757_v25, %v551_v26  ;;  %v828_v28 = vpop.f32.mrb[1].mxu1 }
 0x26c   : > { %v554_v29 = vpop.f32.mrb[2].mxu1 }
 0x26d   : > { %558 = vst [vmem:[%s331_s11] sm:$0xff] %v552_v27  ;;  %v829_v30 = vpop.f32.mrb[3].mxu1 }
 0x26e   : > { %1125 = shalt.err (!%p1122_p4)
}
 0x26f   : > { %s1126_s19 = scalar_lea.hbm %s1510_s16, 128  ;;  %s1130_s30 = scalar_lea.hbm %s1560_s6, 256 }
 0x270   : > { %p1127_p10 = scmp.ne.s32.totalorder %s1510_s16, %s1126_s19  ;;  %p1131_p6 = scmp.lt.u32.totalorder %s1510_s16, %s1560_s6 }
 0x271   : > { %p1132_p7 = scmp.lt.u32.totalorder %s1130_s30, %s1126_s19  ;;  %p1134_p12 = scmp.lt.u32.totalorder %s1126_s19, %s1510_s16 }
 0x272   : > { %p1128_p11 = pnand %p1127_p10, %p1578_p5 }
 0x273   : > { %p1133_p9 = por %p1132_p7, %p1131_p6 }
 0x274   : > { %p1129_p1 = pneg %p1128_p11 }
 0x275   : > { %p1135_p3 = por %p1134_p12, %p1133_p9 }
 0x277   : > { %p1136_p13 = pnand %p1135_p3, %p1129_p1 }
 0x279   : > { %1139 = shalt.err (!%p1136_p13)
}
 0x27a   : > { %849 = dma.vmem_to_hbm [thread:$0]  (%p1578_p5), %s1512_s20, 128, %s1510_s16, %s565_s13  }
 0x27b PF: > { %s603_s11 = sand.u32 1, %s1178_s21   ;;  %p1579_p0 = scmp.ne.s32.totalorder %s1571_s25, 0 }
 0x27c   : > { %p1580_p2 = scmp.ge.s32.totalorder %s1190_s24, 2  ;;  %s604_s29 = scalar_lea.sflag [#allocation4], %s603_s11 }
 0x27e   : > { %p870_p8 = pnand %p1580_p2, %p1579_p0 }
 0x280   : > { %1169 = dma.done.wait (!%p870_p8), %s604_s29, 128  }
 0x281   : > { %1171 = vsyncadd (!%p870_p8), %s604_s29, 4294967168  ;;  %s613_s8 = scalar_lea.sflag [#allocation13], %s603_s11 }
 0x282   : > { %1173 = dma.done.wait (!%p870_p8), %s613_s8, 128  }
 0x283   : > { %1175 = vsyncadd (!%p870_p8), %s613_s8, 4294967168  ;;  %p25_p5 = scmp.ge.s32.totalorder %s1379_s7, 4   ;;  %s1581_s21 = smov %s1182_s22 }
 0x284   : > { %s1582_s22 = smov %s1186_s23  ;;  %s1583_s23 = smov %s1390_s14 }
 0x285   : > { %s1584_s24 = smov %s1379_s7  ;;  %27 = sbr.rel (!%p25_p5) target bundleno = 9 (0x9), region = 118 }
 0x28c   :  { %618 = vsyncpa [#allocation3], 1 }
 0x28d   :  { %620 = vsyncpa [#allocation3 + $0x1], 1 }
 0x28e   :  { %621 = vsyncpa [#allocation6], 1 }
 0x28f   :  { %622 = vsyncpa [#allocation9], 1 }
 0x290   :  { %623 = vsyncpa [#allocation4], 1 }
 0x291   :  { %625 = vsyncpa [#allocation4 + $0x1], 1 }
 0x292   :  { %626 = vsyncpa [#allocation13], 1 }
 0x293   :  { %628 = vsyncpa [#allocation13 + $0x1], 1 }

</bundles_post_ra>
